<compile_context>
chip_gen: v7x
topology: tpu7x:2x2x1
jax: 0.10.0
libtpu: 0.0.40
codegen_flags: <defaults>
</compile_context>

<pallas_src>
import functools

import jax
import jax.numpy as jnp
from jax.experimental import pallas as pl
from jax.experimental.pallas import tpu as pltpu

_LANES = 128          # vreg lane width
_SUBLANES = 8         # f32 sublane granularity
_MAX_TILE_N = 1024    # rows per grid step (cap); keeps tiles tiny vs VMEM
_FASTPATH_MAX_N = 64  # below this, plain XLA beats the Pallas launch overhead


def _round_up(x, m):
    return (x + m - 1) // m * m


def _cdiv(a, b):
    return (a + b - 1) // b


def _linear_kernel(x_ref, w_ref, b_ref, o_ref, *, num_classes):
    # x_ref: (tile_n, K)   w_ref: (K, C_PAD)   b_ref: (1, C_PAD)
    # o_ref: (tile_n, num_classes)
    acc = jnp.dot(x_ref[...], w_ref[...], preferred_element_type=jnp.float32)
    y = acc + b_ref[...]                                  # lane-dense VPU add
    # Narrow store (num_classes lanes): store slots are idle here, and it cuts
    # HBM writeback ~64x vs a 128-lane padded output.
    o_ref[...] = y[:, :num_classes].astype(o_ref.dtype)


def prepare_params(weight, bias):
    """One-time param prep (do NOT call per forward).

    weight: (num_classes, in_features) as stored by torch.nn.Linear.
    bias:   (num_classes,)
    Returns pre-transposed (in_features, C_PAD) weight and (1, C_PAD) bias,
    with C_PAD = round_up(num_classes, 128); padded lanes are zero so they
    never leak into the result.
    """
    num_classes, in_feat = weight.shape
    assert bias.shape == (num_classes,), (bias.shape, num_classes)
    c_pad = _round_up(num_classes, _LANES)
    w_pad = jnp.zeros((in_feat, c_pad), jnp.float32)
    w_pad = w_pad.at[:, :num_classes].set(weight.T.astype(jnp.float32))
    b_pad = jnp.zeros((1, c_pad), jnp.float32)
    b_pad = b_pad.at[0, :num_classes].set(bias.astype(jnp.float32))
    return w_pad, b_pad


def _pick_tile_n(n):
    # >= 2 grid steps when possible (lets the "parallel" N axis shard across
    # both TensorCores on v7x and pipelines DMA everywhere), rows a multiple of
    # the 8-row sublane granularity, capped at _MAX_TILE_N.
    half = _round_up(_cdiv(n, 2), _SUBLANES)
    return max(_SUBLANES, min(_MAX_TILE_N, half))


@functools.partial(jax.jit, static_argnames=("num_classes",))
def mininet_forward(x_nchw, w_pad, b_pad, *, num_classes):
    """x_nchw: (N, 1, 7, 7); w_pad/b_pad from prepare_params()."""
    n = x_nchw.shape[0]
    in_feat = x_nchw.shape[1] * x_nchw.shape[2] * x_nchw.shape[3]
    assert w_pad.shape[0] == in_feat, (w_pad.shape, in_feat)
    assert num_classes <= w_pad.shape[1], (num_classes, w_pad.shape)
    c_pad = w_pad.shape[1]

    # nn.Flatten on NCHW == row-major reshape.
    x_flat = x_nchw.reshape(n, in_feat).astype(jnp.float32)

    if n <= _FASTPATH_MAX_N:
        # Tiny batch: a single sub-microsecond matmul; skip the Pallas launch.
        return x_flat @ w_pad[:, :num_classes] + b_pad[0, :num_classes]

    tile_n = _pick_tile_n(n)
    grid = (_cdiv(n, tile_n),)  # ragged last block: Pallas clips OOB output
                                # writes; OOB input rows only influence rows
                                # that are never written back.

    kernel = functools.partial(_linear_kernel, num_classes=num_classes)
    cost = pl.CostEstimate(
        flops=2 * n * in_feat * num_classes,
        transcendentals=0,
        bytes_accessed=(n * in_feat + in_feat * c_pad + c_pad
                        + n * num_classes) * 4,
    )

    return pl.pallas_call(
        kernel,
        out_shape=jax.ShapeDtypeStruct((n, num_classes), jnp.float32),
        grid_spec=pltpu.PrefetchScalarGridSpec(
            num_scalar_prefetch=0,
            grid=grid,
            in_specs=[
                pl.BlockSpec((tile_n, in_feat), lambda i: (i, 0)),  # streamed x
                pl.BlockSpec((in_feat, c_pad), lambda i: (0, 0)),   # resident W
                pl.BlockSpec((1, c_pad), lambda i: (0, 0)),         # resident bias
            ],
            out_specs=pl.BlockSpec((tile_n, num_classes), lambda i: (i, 0)),
        ),
        compiler_params=pltpu.CompilerParams(
            dimension_semantics=("parallel",)),  # shards N tiles across TCs (v7x)
        cost_estimate=cost,
    )(x_flat, w_pad, b_pad)


if __name__ == "__main__":
    num_classes = 2
    in_features = 1 * 7 * 7

    key = jax.random.PRNGKey(0)
    k_x_small, k_x_big, k_w, k_b = jax.random.split(key, 4)

    # Deterministic param init (PyTorch Linear default: U(-1/sqrt(fan_in), +)).
    bound = 1.0 / jnp.sqrt(jnp.float32(in_features))
    weight = jax.random.uniform(
        k_w, (num_classes, in_features), jnp.float32, -bound, bound)
    bias = jax.random.uniform(
        k_b, (num_classes,), jnp.float32, -bound, bound)

    # One-time parameter prep (pre-transposed + C-padded), outside the hot path.
    w_pad, b_pad = prepare_params(weight, bias)

    # --- Pallas-kernel path (batch above the fast-path threshold) ---
    batch_big = 512
    x_big = jax.random.normal(k_x_big, (batch_big, 1, 7, 7), jnp.float32)
    out_big = mininet_forward(x_big, w_pad, b_pad, num_classes=num_classes)
    jax.block_until_ready(out_big)
    ref_big = x_big.reshape(batch_big, in_features) @ weight.T + bias
    assert out_big.shape == (batch_big, num_classes)
    assert jnp.allclose(out_big, ref_big, atol=1e-5, rtol=1e-5)

    # --- Tiny-batch XLA fast path (matches the module's typical batch=2 use) ---
    batch_small = 2
    x_small = jax.random.normal(k_x_small, (batch_small, 1, 7, 7), jnp.float32)
    out_small = mininet_forward(x_small, w_pad, b_pad, num_classes=num_classes)
    jax.block_until_ready(out_small)
    ref_small = x_small.reshape(batch_small, in_features) @ weight.T + bias
    assert out_small.shape == (batch_small, num_classes)
    assert jnp.allclose(out_small, ref_small, atol=1e-5, rtol=1e-5)

    print("KERNEL_OK")
</pallas_src>

<mosaic_0001>
module attributes {stable_mosaic.version = 11 : i64} {
  func.func @_linear_kernel(%arg0: i32, %arg1: memref<256x49xf32, #tpu.memory_space<vmem>>, %arg2: memref<49x128xf32, #tpu.memory_space<vmem>>, %arg3: memref<1x128xf32, #tpu.memory_space<vmem>>, %arg4: memref<256x2xf32, #tpu.memory_space<vmem>>) attributes {dimension_semantics = [#tpu.dimension_semantics<parallel>], iteration_bounds = array<i64: 2>, scalar_prefetch = 0 : i64, scratch_operands = 0 : i64, tpu.core_type = #tpu.core_type<tc>, window_params = [{transform_indices = @transform_0, window_bounds = array<i64: 256, 49>}, {pipeline_mode = #tpu.pipeline_mode<synchronous>, transform_indices = @transform_1, window_bounds = array<i64: 49, 128>}, {pipeline_mode = #tpu.pipeline_mode<synchronous>, transform_indices = @transform_2, window_bounds = array<i64: 1, 128>}, {transform_indices = @transform_3, window_bounds = array<i64: 256, 2>}]} {
    %c0 = arith.constant 0 : index
    %c0_0 = arith.constant 0 : index
    %0 = vector.load %arg1[%c0, %c0_0] : memref<256x49xf32, #tpu.memory_space<vmem>>, vector<256x49xf32>
    %c0_1 = arith.constant 0 : index
    %c0_2 = arith.constant 0 : index
    %1 = vector.load %arg2[%c0_1, %c0_2] : memref<49x128xf32, #tpu.memory_space<vmem>>, vector<49x128xf32>
    %cst = arith.constant dense<0.000000e+00> : vector<256x128xf32>
    %2 = tpu.matmul %0, %1, %cst {dimension_numbers = #tpu.dot_dimension_numbers<[1], [0], [0], [1], [0, 0, 1, 1], [], []>} : vector<256x49xf32>, vector<49x128xf32>, vector<256x128xf32> -> vector<256x128xf32>
    %c0_3 = arith.constant 0 : index
    %c0_4 = arith.constant 0 : index
    %3 = vector.load %arg3[%c0_3, %c0_4] : memref<1x128xf32, #tpu.memory_space<vmem>>, vector<1x128xf32>
    %4 = vector.broadcast %3 : vector<1x128xf32> to vector<256x128xf32>
    %5 = arith.addf %2, %4 : vector<256x128xf32>
    %6 = vector.extract_strided_slice %5 {offsets = [0, 0], sizes = [256, 2], strides = [1, 1]} : vector<256x128xf32> to vector<256x2xf32>
    %c0_5 = arith.constant 0 : index
    %c0_6 = arith.constant 0 : index
    %7 = vector.load %arg4[%c0_5, %c0_6] : memref<256x2xf32, #tpu.memory_space<vmem>>, vector<256x2xf32>
    tpu.vector_store %arg4[%c0_5, %c0_6], %6 {strides = array<i32>} : memref<256x2xf32, #tpu.memory_space<vmem>>, vector<256x2xf32>,
    return
  }
  func.func @transform_0(%arg0: i32) -> (i32, i32) {
    %c0_i32 = arith.constant 0 : i32
    %c0_i32_0 = arith.constant 0 : i32
    return %arg0, %c0_i32 : i32, i32
  }
  func.func @transform_1(%arg0: i32) -> (i32, i32) {
    %c0_i32 = arith.constant 0 : i32
    %c0_i32_0 = arith.constant 0 : i32
    %c0_i32_1 = arith.constant 0 : i32
    return %c0_i32, %c0_i32_0 : i32, i32
  }
  func.func @transform_2(%arg0: i32) -> (i32, i32) {
    %c0_i32 = arith.constant 0 : i32
    %c0_i32_0 = arith.constant 0 : i32
    %c0_i32_1 = arith.constant 0 : i32
    return %c0_i32, %c0_i32_0 : i32, i32
  }
  func.func @transform_3(%arg0: i32) -> (i32, i32) {
    %c0_i32 = arith.constant 0 : i32
    %c0_i32_0 = arith.constant 0 : i32
    return %arg0, %c0_i32 : i32, i32
  }
}

</mosaic_0001>

<bundles_post_ra>
// kernel: mininet_forward.1
= control target key start
LH: loop header
LB: loop body
LE: loop exit
PB: predicated region body
PF: predicated region fallthrough
CT: control target
= control target key end

     0   :  { %s837_s12 = smov 0   ;;  %s1051_s0 = inlined_call_operand.vmem [shape: f32[512,49], index: 0, kind: input, shape index: {}]   ;;  %s1052_s1 = inlined_call_operand.vmem [shape: f32[49,128], index: 1, kind: input, shape index: {}]   ;;  %s1053_s2 = inlined_call_operand.vmem [shape: f32[1,128], index: 2, kind: input, shape index: {}]   ;;  %s1054_s3 = inlined_call_operand.vmem [shape: f32[512,2], index: 3, kind: output, shape index: {}]  }
   0x1 LB: > { %s635_s13 = sadd.s32 4294967295, %s815_s12   ;;  %p639_p0 = scmp.ge.s32.totalorder %s815_s12, 1  ;;  %s815_s12 = sphi %s837_s12, %s13_s12  }
   0x2   : > { %p138_p1 = scmp.lt.s32.totalorder %s815_s12, 3 }
   0x4   : > { %p139_p2 = pnand %p639_p0, %p138_p1 }
   0x5   : > { %v206_v0 = vld [vmem:[%s1052_s1] sm:$0xff] (!%p139_p2)  ;;  %v207_v1 = vld [vmem:[%s1052_s1 + $0x8] sm:$0xff] (!%p139_p2)  ;;  %v208_v2 = vld [vmem:[%s1052_s1 + $0x10] sm:$0xff] (!%p139_p2)  ;;  %s640_s20 = sshll.u32 (!%p139_p2), %s635_s13, 5  ;;  %vm220_vm0 = vcmask (!%p139_p2), 400384   ;;  %vm317_vm1 = vcmask (!%p139_p2), 1040384  }
   0x6   : > { %142 = sbr.rel (%p139_p2) target bundleno = 267 (0x10b), region = 32  ;;  %v781_v3 = vpack.c.bf16 (!%p139_p2), %v207_v1, %v206_v0  ;;  %v209_v4 = vld [vmem:[%s1052_s1 + $0x18] sm:$0xff] (!%p139_p2)  ;;  %p163_p3 = scmp.lt.s32.totalorder (!%p139_p2), %s640_s20, 63  ;;  %v210_v6 = vld [vmem:[%s1052_s1 + $0x20] sm:$0xff] (!%p139_p2)  ;;  %v211_v7 = vld [vmem:[%s1052_s1 + $0x28] sm:$0xff] (!%p139_p2)  ;;  %vm546_vm2 = vcmask (!%p139_p2), 15360  }
   0x7   : > { %v785_v5 = vpack.c.bf16 (!%p139_p2), %v209_v4, %v208_v2  ;;  %v789_v8 = vpack.c.bf16 (!%p139_p2), %v211_v7, %v210_v6  ;;  %v212_v11 = vld [vmem:[%s1052_s1 + $0x30] sm:$0x1] (!%p139_p2)  ;;  %v943_v42 = vld [vmem:[%s1053_s2] ss:$0 sm:$0xff] (!%p139_p2) }
   0x8   : > { %782 = vmatprep.subr.bf16.mxu0 (!%p139_p2), %v781_v3  ;;  %793 = vmatprep.subr.bf16.mxu1 (!%p139_p2), %v781_v3 }
   0x9   : > { %784 = vmatpush3.bf16.msra.mxu0 (!%p139_p2), %v781_v3  ;;  %797 = vmatpush3.bf16.msra.mxu1 (!%p139_p2), %v781_v3 }
   0xa   : > { %786 = vmatprep.subr.bf16.mxu0 (!%p139_p2), %v785_v5  ;;  %794 = vmatprep.subr.bf16.mxu1 (!%p139_p2), %v785_v5 }
   0xd   : > { %s1056_s20 = smov (!%p163_p3, %s640_s20), 63  ;;  %788 = vmatpush3.bf16.msra.mxu0 %v785_v5  ;;  %798 = vmatpush3.bf16.msra.mxu1 %v785_v5 }
   0xe   : > { %s641_s27 = sshll.u32 %s1056_s20, 3  ;;  %790 = vmatprep.subr.bf16.mxu0 %v789_v8  ;;  %795 = vmatprep.subr.bf16.mxu1 %v789_v8 }
   0xf   : > { %s871_s30 = scalar_lea.vmem %s1051_s0, %s641_s27  ;;  %s950_s10 = scalar_lea.vmem %s1054_s3, %s641_s27 }
  0x10   : > { %v174_v9 = vld [vmem:[%s871_s30] sm:$0xff]  ;;  %v175_v12 = vld [vmem:[%s871_s30 + $0x8] sm:$0xff]  ;;  %v176_v14 = vld [vmem:[%s871_s30 + $0x10] sm:$0xff] }
  0x11   : > { %v190_v10 = vld [vmem:[%s871_s30 + $0x80] sm:$0xff]  ;;  %733 = vmatprep.mubr.msk.f32.mxu0 %vm220_vm0, %v174_v9  ;;  %792 = vmatpush3.bf16.msra.mxu0 %v789_v8  ;;  %v191_v13 = vld [vmem:[%s871_s30 + $0x88] sm:$0xff]  ;;  %v192_v15 = vld [vmem:[%s871_s30 + $0x90] sm:$0xff] }
  0x12   : > { %757 = vmatprep.mubr.msk.f32.mxu1 %vm220_vm0, %v190_v10  ;;  %799 = vmatpush3.bf16.msra.mxu1 %v789_v8  ;;  %v177_v16 = vld [vmem:[%s871_s30 + $0x18] sm:$0xff]  ;;  %v178_v18 = vld [vmem:[%s871_s30 + $0x20] sm:$0xff]  ;;  %v179_v20 = vld [vmem:[%s871_s30 + $0x28] sm:$0xff] }
  0x13   : > { %731 = vmatprep.subr.msk.mxu0 %vm317_vm1, %v212_v11  ;;  %796 = vmatprep.subr.msk.mxu1 %vm317_vm1, %v212_v11  ;;  %v193_v17 = vld [vmem:[%s871_s30 + $0x98] sm:$0xff]  ;;  %v194_v19 = vld [vmem:[%s871_s30 + $0xa0] sm:$0xff]  ;;  %v195_v21 = vld [vmem:[%s871_s30 + $0xa8] sm:$0xff] }
  0x14   : > { %v180_v22 = vld [vmem:[%s871_s30 + $0x30] sm:$0xff]  ;;  %v181_v24 = vld [vmem:[%s871_s30 + $0x38] sm:$0xff]  ;;  %v182_v26 = vld [vmem:[%s871_s30 + $0x40] sm:$0xff] }
  0x15   : > { %732 = vmatpush3.msk.msra.mxu0 %vm317_vm1, %v212_v11  ;;  %v196_v23 = vld [vmem:[%s871_s30 + $0xb0] sm:$0xff]  ;;  %v197_v25 = vld [vmem:[%s871_s30 + $0xb8] sm:$0xff]  ;;  %v198_v27 = vld [vmem:[%s871_s30 + $0xc0] sm:$0xff] }
  0x16   : > { %800 = vmatpush3.msk.msra.mxu1 %vm317_vm1, %v212_v11  ;;  %734 = vmatmul.mubr.msk.f32.vlgmr.msra.gmra.mrb[0].mxu0 %vm220_vm0, %v175_v12  ;;  %v183_v28 = vld [vmem:[%s871_s30 + $0x48] sm:$0xff]  ;;  %v184_v30 = vld [vmem:[%s871_s30 + $0x50] sm:$0xff]  ;;  %v185_v32 = vld [vmem:[%s871_s30 + $0x58] sm:$0xff] }
  0x17   : > { %758 = vmatmul.mubr.msk.f32.vlgmr.msra.gmra.mrb[0].mxu1 %vm220_vm0, %v191_v13  ;;  %736 = vmatprep.mubr.msk.f32.mxu0 %vm220_vm0, %v176_v14  ;;  %v199_v29 = vld [vmem:[%s871_s30 + $0xc8] sm:$0xff]  ;;  %v200_v31 = vld [vmem:[%s871_s30 + $0xd0] sm:$0xff]  ;;  %v201_v33 = vld [vmem:[%s871_s30 + $0xd8] sm:$0xff] }
  0x18   : > { %760 = vmatprep.mubr.msk.f32.mxu1 %vm220_vm0, %v192_v15  ;;  %v186_v34 = vld [vmem:[%s871_s30 + $0x60] sm:$0xff]  ;;  %v187_v36 = vld [vmem:[%s871_s30 + $0x68] sm:$0xff]  ;;  %v188_v38 = vld [vmem:[%s871_s30 + $0x70] sm:$0xff] }
  0x19   : > { %v202_v35 = vld [vmem:[%s871_s30 + $0xe0] sm:$0xff]  ;;  %v203_v37 = vld [vmem:[%s871_s30 + $0xe8] sm:$0xff]  ;;  %v204_v39 = vld [vmem:[%s871_s30 + $0xf0] sm:$0xff] }
  0x1a   : > { %737 = vmatmul.mubr.msk.f32.gmra.mrb[2].mxu0 %vm220_vm0, %v177_v16  ;;  %v189_v40 = vld [vmem:[%s871_s30 + $0x78] sm:$0xff] }
  0x1b   : > { %761 = vmatmul.mubr.msk.f32.gmra.mrb[2].mxu1 %vm220_vm0, %v193_v17  ;;  %739 = vmatprep.mubr.msk.f32.mxu0 %vm220_vm0, %v178_v18  ;;  %v205_v41 = vld [vmem:[%s871_s30 + $0xf8] sm:$0xff] }
  0x1c   : > { %763 = vmatprep.mubr.msk.f32.mxu1 %vm220_vm0, %v194_v19 }
  0x1e   : > { %740 = vmatmul.mubr.msk.f32.gmra.mrb[4].mxu0 %vm220_vm0, %v179_v20 }
  0x1f   : > { %764 = vmatmul.mubr.msk.f32.gmra.mrb[4].mxu1 %vm220_vm0, %v195_v21  ;;  %742 = vmatprep.mubr.msk.f32.mxu0 %vm220_vm0, %v180_v22 }
  0x20   : > { %766 = vmatprep.mubr.msk.f32.mxu1 %vm220_vm0, %v196_v23 }
  0x22   : > { %743 = vmatmul.mubr.msk.f32.gmra.mrb[6].mxu0 %vm220_vm0, %v181_v24 }
  0x23   : > { %767 = vmatmul.mubr.msk.f32.gmra.mrb[6].mxu1 %vm220_vm0, %v197_v25  ;;  %745 = vmatprep.mubr.msk.f32.mxu0 %vm220_vm0, %v182_v26 }
  0x24   : > { %769 = vmatprep.mubr.msk.f32.mxu1 %vm220_vm0, %v198_v27 }
  0x26   : > { %746 = vmatmul.mubr.msk.f32.gmra.mrb[8].mxu0 %vm220_vm0, %v183_v28 }
  0x27   : > { %770 = vmatmul.mubr.msk.f32.gmra.mrb[8].mxu1 %vm220_vm0, %v199_v29  ;;  %748 = vmatprep.mubr.msk.f32.mxu0 %vm220_vm0, %v184_v30 }
  0x28   : > { %772 = vmatprep.mubr.msk.f32.mxu1 %vm220_vm0, %v200_v31 }
  0x2a   : > { %749 = vmatmul.mubr.msk.f32.gmra.mrb[10].mxu0 %vm220_vm0, %v185_v32 }
  0x2b   : > { %773 = vmatmul.mubr.msk.f32.gmra.mrb[10].mxu1 %vm220_vm0, %v201_v33  ;;  %751 = vmatprep.mubr.msk.f32.mxu0 %vm220_vm0, %v186_v34 }
  0x2c   : > { %775 = vmatprep.mubr.msk.f32.mxu1 %vm220_vm0, %v202_v35 }
  0x2e   : > { %752 = vmatmul.mubr.msk.f32.gmra.mrb[12].mxu0 %vm220_vm0, %v187_v36 }
  0x2f   : > { %776 = vmatmul.mubr.msk.f32.gmra.mrb[12].mxu1 %vm220_vm0, %v203_v37  ;;  %754 = vmatprep.mubr.msk.f32.mxu0 %vm220_vm0, %v188_v38 }
  0x30   : > { %778 = vmatprep.mubr.msk.f32.mxu1 %vm220_vm0, %v204_v39 }
  0x32   : > { %755 = vmatmul.mubr.msk.f32.gmra.mrb[14].mxu0 %vm220_vm0, %v189_v40 }
  0x33   : > { %779 = vmatmul.mubr.msk.f32.gmra.mrb[14].mxu1 %vm220_vm0, %v205_v41 }
  0xe9   : > { %v735_v43 = vpop.f32.mrb[0].mxu0 }
  0xea   : > { %v759_v44 = vpop.f32.mrb[0].mxu1  ;;  %v393_v45 = vadd.f32 %v735_v43, %v943_v42  ;;  %v387_v47 = vpop.f32.mrb[1].mxu0 }
  0xeb   : > { %v473_v46 = vadd.f32 %v759_v44, %v943_v42  ;;  %v467_v48 = vpop.f32.mrb[1].mxu1  ;;  %v388_v49 = vadd.f32 %v943_v42, %v387_v47 }
  0xec   : > { %v468_v50 = vadd.f32 %v943_v42, %v467_v48  ;;  %548 = vst.msk [vmem:[%s950_s10 + $0x8] sm:$0xff] %vm546_vm2, %v393_v45 }
  0xed   : > { %564 = vst.msk [vmem:[%s950_s10 + $0x88] sm:$0xff] %vm546_vm2, %v473_v46  ;;  %547 = vst.msk [vmem:[%s950_s10] sm:$0xff] %vm546_vm2, %v388_v49  ;;  %v738_v51 = vpop.f32.mrb[2].mxu0 }
  0xee   : > { %563 = vst.msk [vmem:[%s950_s10 + $0x80] sm:$0xff] %vm546_vm2, %v468_v50  ;;  %v762_v52 = vpop.f32.mrb[2].mxu1  ;;  %v403_v53 = vadd.f32 %v738_v51, %v943_v42  ;;  %v397_v55 = vpop.f32.mrb[3].mxu0 }
  0xef   : > { %v483_v54 = vadd.f32 %v762_v52, %v943_v42  ;;  %v477_v56 = vpop.f32.mrb[3].mxu1  ;;  %v398_v57 = vadd.f32 %v943_v42, %v397_v55 }
  0xf0   : > { %v478_v58 = vadd.f32 %v943_v42, %v477_v56  ;;  %550 = vst.msk [vmem:[%s950_s10 + $0x18] sm:$0xff] %vm546_vm2, %v403_v53 }
  0xf1   : > { %566 = vst.msk [vmem:[%s950_s10 + $0x98] sm:$0xff] %vm546_vm2, %v483_v54  ;;  %549 = vst.msk [vmem:[%s950_s10 + $0x10] sm:$0xff] %vm546_vm2, %v398_v57  ;;  %v741_v59 = vpop.f32.mrb[4].mxu0 }
  0xf2   : > { %565 = vst.msk [vmem:[%s950_s10 + $0x90] sm:$0xff] %vm546_vm2, %v478_v58  ;;  %v765_v60 = vpop.f32.mrb[4].mxu1  ;;  %v413_v61 = vadd.f32 %v741_v59, %v943_v42  ;;  %v407_v63 = vpop.f32.mrb[5].mxu0 }
  0xf3   : > { %v493_v62 = vadd.f32 %v765_v60, %v943_v42  ;;  %v487_v0 = vpop.f32.mrb[5].mxu1  ;;  %v408_v1 = vadd.f32 %v943_v42, %v407_v63 }
  0xf4   : > { %v488_v2 = vadd.f32 %v943_v42, %v487_v0  ;;  %552 = vst.msk [vmem:[%s950_s10 + $0x28] sm:$0xff] %vm546_vm2, %v413_v61 }
  0xf5   : > { %568 = vst.msk [vmem:[%s950_s10 + $0xa8] sm:$0xff] %vm546_vm2, %v493_v62  ;;  %551 = vst.msk [vmem:[%s950_s10 + $0x20] sm:$0xff] %vm546_vm2, %v408_v1  ;;  %v744_v3 = vpop.f32.mrb[6].mxu0 }
  0xf6   : > { %567 = vst.msk [vmem:[%s950_s10 + $0xa0] sm:$0xff] %vm546_vm2, %v488_v2  ;;  %v768_v4 = vpop.f32.mrb[6].mxu1  ;;  %v423_v5 = vadd.f32 %v744_v3, %v943_v42  ;;  %v417_v7 = vpop.f32.mrb[7].mxu0 }
  0xf7   : > { %v503_v6 = vadd.f32 %v768_v4, %v943_v42  ;;  %v497_v8 = vpop.f32.mrb[7].mxu1  ;;  %v418_v9 = vadd.f32 %v943_v42, %v417_v7 }
  0xf8   : > { %v498_v10 = vadd.f32 %v943_v42, %v497_v8  ;;  %554 = vst.msk [vmem:[%s950_s10 + $0x38] sm:$0xff] %vm546_vm2, %v423_v5 }
  0xf9   : > { %570 = vst.msk [vmem:[%s950_s10 + $0xb8] sm:$0xff] %vm546_vm2, %v503_v6  ;;  %553 = vst.msk [vmem:[%s950_s10 + $0x30] sm:$0xff] %vm546_vm2, %v418_v9  ;;  %v747_v11 = vpop.f32.mrb[8].mxu0 }
  0xfa   : > { %569 = vst.msk [vmem:[%s950_s10 + $0xb0] sm:$0xff] %vm546_vm2, %v498_v10  ;;  %v771_v12 = vpop.f32.mrb[8].mxu1  ;;  %v433_v13 = vadd.f32 %v747_v11, %v943_v42  ;;  %v427_v15 = vpop.f32.mrb[9].mxu0 }
  0xfb   : > { %v513_v14 = vadd.f32 %v771_v12, %v943_v42  ;;  %v507_v16 = vpop.f32.mrb[9].mxu1  ;;  %v428_v17 = vadd.f32 %v943_v42, %v427_v15 }
  0xfc   : > { %v508_v18 = vadd.f32 %v943_v42, %v507_v16  ;;  %556 = vst.msk [vmem:[%s950_s10 + $0x48] sm:$0xff] %vm546_vm2, %v433_v13 }
  0xfd   : > { %572 = vst.msk [vmem:[%s950_s10 + $0xc8] sm:$0xff] %vm546_vm2, %v513_v14  ;;  %555 = vst.msk [vmem:[%s950_s10 + $0x40] sm:$0xff] %vm546_vm2, %v428_v17  ;;  %v750_v19 = vpop.f32.mrb[10].mxu0 }
  0xfe   : > { %571 = vst.msk [vmem:[%s950_s10 + $0xc0] sm:$0xff] %vm546_vm2, %v508_v18  ;;  %v774_v20 = vpop.f32.mrb[10].mxu1  ;;  %v443_v21 = vadd.f32 %v750_v19, %v943_v42  ;;  %v437_v23 = vpop.f32.mrb[11].mxu0 }
  0xff   : > { %v523_v22 = vadd.f32 %v774_v20, %v943_v42  ;;  %v517_v24 = vpop.f32.mrb[11].mxu1  ;;  %v438_v25 = vadd.f32 %v943_v42, %v437_v23 }
 0x100   : > { %v518_v26 = vadd.f32 %v943_v42, %v517_v24  ;;  %558 = vst.msk [vmem:[%s950_s10 + $0x58] sm:$0xff] %vm546_vm2, %v443_v21 }
 0x101   : > { %574 = vst.msk [vmem:[%s950_s10 + $0xd8] sm:$0xff] %vm546_vm2, %v523_v22  ;;  %557 = vst.msk [vmem:[%s950_s10 + $0x50] sm:$0xff] %vm546_vm2, %v438_v25  ;;  %v753_v27 = vpop.f32.mrb[12].mxu0 }
 0x102   : > { %573 = vst.msk [vmem:[%s950_s10 + $0xd0] sm:$0xff] %vm546_vm2, %v518_v26  ;;  %v777_v28 = vpop.f32.mrb[12].mxu1  ;;  %v453_v29 = vadd.f32 %v753_v27, %v943_v42  ;;  %v447_v31 = vpop.f32.mrb[13].mxu0 }
 0x103   : > { %v533_v30 = vadd.f32 %v777_v28, %v943_v42  ;;  %v527_v32 = vpop.f32.mrb[13].mxu1  ;;  %v448_v33 = vadd.f32 %v943_v42, %v447_v31 }
 0x104   : > { %v528_v34 = vadd.f32 %v943_v42, %v527_v32  ;;  %560 = vst.msk [vmem:[%s950_s10 + $0x68] sm:$0xff] %vm546_vm2, %v453_v29 }
 0x105   : > { %576 = vst.msk [vmem:[%s950_s10 + $0xe8] sm:$0xff] %vm546_vm2, %v533_v30  ;;  %559 = vst.msk [vmem:[%s950_s10 + $0x60] sm:$0xff] %vm546_vm2, %v448_v33  ;;  %v756_v35 = vpop.f32.mrb[14].mxu0 }
 0x106   : > { %575 = vst.msk [vmem:[%s950_s10 + $0xe0] sm:$0xff] %vm546_vm2, %v528_v34  ;;  %v780_v36 = vpop.f32.mrb[14].mxu1  ;;  %v463_v37 = vadd.f32 %v756_v35, %v943_v42  ;;  %v457_v39 = vpop.f32.mrb[15].mxu0 }
 0x107   : > { %v543_v38 = vadd.f32 %v780_v36, %v943_v42  ;;  %v537_v40 = vpop.f32.mrb[15].mxu1  ;;  %v458_v41 = vadd.f32 %v943_v42, %v457_v39 }
 0x108   : > { %v538_v43 = vadd.f32 %v943_v42, %v537_v40  ;;  %562 = vst.msk [vmem:[%s950_s10 + $0x78] sm:$0xff] %vm546_vm2, %v463_v37 }
 0x109   : > { %578 = vst.msk [vmem:[%s950_s10 + $0xf8] sm:$0xff] %vm546_vm2, %v543_v38  ;;  %561 = vst.msk [vmem:[%s950_s10 + $0x70] sm:$0xff] %vm546_vm2, %v458_v41 }
 0x10a   : > { %577 = vst.msk [vmem:[%s950_s10 + $0xf0] sm:$0xff] %vm546_vm2, %v538_v43 }
 0x10b PF: > { %s13_s12 = sadd.s32 1, %s815_s12  }
 0x10c   : > { %p10_p4 = scmp.ge.s32.totalorder %s13_s12, 4  }
 0x10e   :  { %12 = sbr.rel (!%p10_p4) target bundleno = 1 (0x1), region = 62 }

</bundles_post_ra>
